<compile_context>
chip_gen: v7x
topology: tpu7x:2x2x1
jax: 0.10.0
libtpu: 0.0.40
codegen_flags: <defaults>
</compile_context>

<pallas_src>
import functools

import jax
import jax.numpy as jnp
from jax.experimental import pallas as pl
from jax.experimental.pallas import tpu as pltpu

PAD = 128  # lane-dense feature padding (vreg lane width)


def mlp_kernel(x_ref, w_ref, b_ref, o_ref):
    """x_ref: (TB, in_f) f32, w_ref: (L, PAD, PAD) bf16 in (in, out) layout,
    b_ref: (L, 1, PAD) f32, o_ref: (TB, PAD) bf16."""
    num_layers = w_ref.shape[0]   # static at trace time (6)
    in_f = x_ref.shape[1]         # static (32)

    # Layer 1: cast the raw f32 tile to bf16 and contract only over the real
    # in_f rows of the zero-padded weight -> (TB, PAD) f32 accumulation on MXU.
    h = x_ref[...].astype(jnp.bfloat16)
    y = jnp.dot(h, w_ref[0, :in_f, :], preferred_element_type=jnp.float32)
    h = jnp.maximum(y + b_ref[0], 0.0).astype(jnp.bfloat16)

    # Layers 2..6 (statically unrolled).  Bias-add + ReLU in f32, then one cast
    # to bf16 per layer so only the bf16 activation is carried between dots.
    # dropout_1 / dropout_2 / dropout_3 are identity in eval mode.
    for l in range(1, num_layers):
        y = jnp.dot(h, w_ref[l], preferred_element_type=jnp.float32)
        h = jnp.maximum(y + b_ref[l], 0.0).astype(jnp.bfloat16)

    o_ref[...] = h  # lane-dense (128-wide) unmasked bf16 store
    # TODO(synk): training-mode dropout (stochastic masking + 1/(1-p) scaling
    # via pltpu.prng_*) is not implemented; eval-mode semantics only.


def init_linear(key, in_features, out_features):
    """Deterministic init mimicking PyTorch nn.Linear default (uniform +-1/sqrt(in))."""
    kw, kb = jax.random.split(key)
    bound = 1.0 / jnp.sqrt(jnp.float32(in_features))
    # PyTorch stores weight as (out, in); keep that convention here.
    w = jax.random.uniform(kw, (out_features, in_features), jnp.float32, -bound, bound)
    b = jax.random.uniform(kb, (out_features,), jnp.float32, -bound, bound)
    return w, b


def pack_params(params, pad=PAD):
    """One-time packing: PyTorch (out, in) weights -> single padded bf16 slab.

    Returns (w_slab (L, pad, pad) bf16 in (in, out) layout, b_slab (L, 1, pad) f32).
    Done once outside the forward path, so no per-call transposes / copies.
    """
    w_blocks, b_blocks = [], []
    for w, b in params:
        w = jnp.asarray(w, jnp.float32)           # (out, in)
        wt = w.T                                  # (in, out)
        in_f, out_f = wt.shape
        w_p = jnp.zeros((pad, pad), jnp.float32).at[:in_f, :out_f].set(wt)
        b_p = jnp.zeros((1, pad), jnp.float32).at[0, :out_f].set(
            jnp.asarray(b, jnp.float32))
        w_blocks.append(w_p.astype(jnp.bfloat16))
        b_blocks.append(b_p)
    return jnp.stack(w_blocks), jnp.stack(b_blocks)


def _round_up(x, m):
    return ((x + m - 1) // m) * m


def _choose_tile_b(batch, max_tile_b):
    """Large tiles (MXU occupancy, per-step overhead) but >=2 grid blocks when
    the batch allows (v7x megacore).  Always 16-aligned (bf16 sublane pack),
    never larger than the batch."""
    if batch <= 16:
        return batch  # single block == full array dims (always legal)
    return min(max_tile_b, _round_up(pl.cdiv(batch, 2), 16))


@functools.partial(jax.jit, static_argnames=("out_features", "max_tile_b"))
def neural_net_forward(x, w_slab, b_slab, *, out_features, max_tile_b=512):
    """x: (batch, in_features) f32. Returns (batch, out_features) f32."""
    batch, in_f = x.shape
    num_layers, pad, _ = w_slab.shape

    tile_b = _choose_tile_b(batch, max_tile_b)
    grid_b = pl.cdiv(batch, tile_b)

    out = pl.pallas_call(
        mlp_kernel,
        out_shape=jax.ShapeDtypeStruct((batch, pad), jnp.bfloat16),
        grid=(grid_b,),
        in_specs=[
            # Raw (un-padded) f32 input tile, streamed / double-buffered over
            # the batch grid.  Last dim == full array dim -> (8,128) rule OK.
            # A partial last block reads clamped/garbage rows that are masked
            # out on writeback.
            pl.BlockSpec((tile_b, in_f), lambda i: (i, 0)),
            # Weight + bias slabs: constant block index -> VMEM-resident,
            # DMA'd once instead of per step.
            pl.BlockSpec((num_layers, pad, pad), lambda i: (0, 0, 0)),
            pl.BlockSpec((num_layers, 1, pad), lambda i: (0, 0, 0)),
        ],
        out_specs=pl.BlockSpec((tile_b, pad), lambda i: (i, 0)),
        compiler_params=pltpu.CompilerParams(
            dimension_semantics=("parallel",),   # megacore sharding on v7x
        ),
    )(x, w_slab, b_slab)

    # Keep the kernel writeback lane-dense bf16; slice the real columns and
    # up-cast here (bytes are tiny compared to the kernel's streams).
    return out[:, :out_features].astype(jnp.float32)


def reference_forward(x, params):
    """Pure-JAX reference with the same bf16 rounding as the kernel."""
    h = jnp.asarray(x, jnp.float32).astype(jnp.bfloat16)
    for w, b in params:
        wt = jnp.asarray(w, jnp.float32).astype(jnp.bfloat16).T   # (in, out)
        y = jnp.dot(h, wt, preferred_element_type=jnp.float32)
        y = y + jnp.asarray(b, jnp.float32)
        h = jnp.maximum(y, 0.0).astype(jnp.bfloat16)
    return h.astype(jnp.float32)


if __name__ == "__main__":
    # Small shapes consistent with the module's constructor.
    input_size = 32
    hidden_size_1 = 64
    hidden_size_2 = 32
    batch = 30  # matches the module's DataLoader batch_size; not a tile multiple

    key = jax.random.PRNGKey(0)
    keys = jax.random.split(key, 8)

    # fc1..fc6 (self.output exists in __init__ but is unused in forward()).
    params = [
        init_linear(keys[0], input_size, hidden_size_1),               # fc1
        init_linear(keys[1], hidden_size_1, hidden_size_1),            # fc2
        init_linear(keys[2], hidden_size_1, hidden_size_1),            # fc3
        init_linear(keys[3], hidden_size_1, hidden_size_2),            # fc4
        init_linear(keys[4], hidden_size_2, hidden_size_2 // 2),       # fc5
        init_linear(keys[5], hidden_size_2 // 2, hidden_size_2 // 4),  # fc6
    ]
    out_features = hidden_size_2 // 4  # 8

    # One-time parameter packing (padded, pre-transposed, bf16 slab).
    w_slab, b_slab = pack_params(params)

    x = jax.random.normal(keys[6], (batch, input_size), jnp.float32)

    out = neural_net_forward(x, w_slab, b_slab, out_features=out_features)
    out = jax.block_until_ready(out)

    ref = reference_forward(x, params)
    assert out.shape == (batch, out_features), out.shape
    max_err = float(jnp.max(jnp.abs(out - ref)))
    assert jnp.allclose(out, ref, atol=5e-3, rtol=1e-2), (
        f"mismatch vs JAX reference: max abs err = {max_err}")

    print("KERNEL_OK")
</pallas_src>

<mosaic_0001>
module attributes {stable_mosaic.version = 11 : i64} {
  func.func @mlp_kernel(%arg0: i32, %arg1: memref<16x32xf32, #tpu.memory_space<vmem>>, %arg2: memref<6x128x128xbf16, #tpu.memory_space<vmem>>, %arg3: memref<6x1x128xf32, #tpu.memory_space<vmem>>, %arg4: memref<16x128xbf16, #tpu.memory_space<vmem>>) attributes {dimension_semantics = [#tpu.dimension_semantics<parallel>], iteration_bounds = array<i64: 2>, scalar_prefetch = 0 : i64, scratch_operands = 0 : i64, tpu.core_type = #tpu.core_type<tc>, window_params = [{transform_indices = @transform_0, window_bounds = array<i64: 16, 32>}, {pipeline_mode = #tpu.pipeline_mode<synchronous>, transform_indices = @transform_1, window_bounds = array<i64: 6, 128, 128>}, {pipeline_mode = #tpu.pipeline_mode<synchronous>, transform_indices = @transform_2, window_bounds = array<i64: 6, 1, 128>}, {transform_indices = @transform_3, window_bounds = array<i64: 16, 128>}]} {
    %c0 = arith.constant 0 : index
    %c0_0 = arith.constant 0 : index
    %0 = vector.load %arg1[%c0, %c0_0] : memref<16x32xf32, #tpu.memory_space<vmem>>, vector<16x32xf32>
    %1 = arith.truncf %0 : vector<16x32xf32> to vector<16x32xbf16>
    %c0_1 = arith.constant 0 : index
    %c0_2 = arith.constant 0 : index
    %c0_3 = arith.constant 0 : index
    %2 = vector.load %arg2[%c0_1, %c0_2, %c0_3] : memref<6x128x128xbf16, #tpu.memory_space<vmem>>, vector<1x32x128xbf16>
    %3 = vector.shape_cast %2 : vector<1x32x128xbf16> to vector<32x128xbf16>
    %cst = arith.constant dense<0.000000e+00> : vector<16x128xf32>
    %4 = tpu.matmul %1, %3, %cst {dimension_numbers = #tpu.dot_dimension_numbers<[1], [0], [0], [1], [0, 0, 1, 1], [], []>} : vector<16x32xbf16>, vector<32x128xbf16>, vector<16x128xf32> -> vector<16x128xf32>
    %c0_4 = arith.constant 0 : index
    %c0_5 = arith.constant 0 : index
    %c0_6 = arith.constant 0 : index
    %5 = vector.load %arg3[%c0_4, %c0_5, %c0_6] : memref<6x1x128xf32, #tpu.memory_space<vmem>>, vector<1x1x128xf32>
    %6 = vector.shape_cast %5 : vector<1x1x128xf32> to vector<1x128xf32>
    %7 = vector.broadcast %6 : vector<1x128xf32> to vector<16x128xf32>
    %8 = arith.addf %4, %7 : vector<16x128xf32>
    %cst_7 = arith.constant 0.000000e+00 : f32
    %9 = vector.broadcast %cst_7 : f32 to vector<16x128xf32>
    %10 = arith.maximumf %8, %9 : vector<16x128xf32>
    %11 = arith.truncf %10 : vector<16x128xf32> to vector<16x128xbf16>
    %c1 = arith.constant 1 : index
    %c0_8 = arith.constant 0 : index
    %c0_9 = arith.constant 0 : index
    %12 = vector.load %arg2[%c1, %c0_8, %c0_9] : memref<6x128x128xbf16, #tpu.memory_space<vmem>>, vector<1x128x128xbf16>
    %13 = vector.shape_cast %12 : vector<1x128x128xbf16> to vector<128x128xbf16>
    %cst_10 = arith.constant dense<0.000000e+00> : vector<16x128xf32>
    %14 = tpu.matmul %11, %13, %cst_10 {dimension_numbers = #tpu.dot_dimension_numbers<[1], [0], [0], [1], [0, 0, 1, 1], [], []>} : vector<16x128xbf16>, vector<128x128xbf16>, vector<16x128xf32> -> vector<16x128xf32>
    %c1_11 = arith.constant 1 : index
    %c0_12 = arith.constant 0 : index
    %c0_13 = arith.constant 0 : index
    %15 = vector.load %arg3[%c1_11, %c0_12, %c0_13] : memref<6x1x128xf32, #tpu.memory_space<vmem>>, vector<1x1x128xf32>
    %16 = vector.shape_cast %15 : vector<1x1x128xf32> to vector<1x128xf32>
    %17 = vector.broadcast %16 : vector<1x128xf32> to vector<16x128xf32>
    %18 = arith.addf %14, %17 : vector<16x128xf32>
    %cst_14 = arith.constant 0.000000e+00 : f32
    %19 = vector.broadcast %cst_14 : f32 to vector<16x128xf32>
    %20 = arith.maximumf %18, %19 : vector<16x128xf32>
    %21 = arith.truncf %20 : vector<16x128xf32> to vector<16x128xbf16>
    %c2 = arith.constant 2 : index
    %c0_15 = arith.constant 0 : index
    %c0_16 = arith.constant 0 : index
    %22 = vector.load %arg2[%c2, %c0_15, %c0_16] : memref<6x128x128xbf16, #tpu.memory_space<vmem>>, vector<1x128x128xbf16>
    %23 = vector.shape_cast %22 : vector<1x128x128xbf16> to vector<128x128xbf16>
    %cst_17 = arith.constant dense<0.000000e+00> : vector<16x128xf32>
    %24 = tpu.matmul %21, %23, %cst_17 {dimension_numbers = #tpu.dot_dimension_numbers<[1], [0], [0], [1], [0, 0, 1, 1], [], []>} : vector<16x128xbf16>, vector<128x128xbf16>, vector<16x128xf32> -> vector<16x128xf32>
    %c2_18 = arith.constant 2 : index
    %c0_19 = arith.constant 0 : index
    %c0_20 = arith.constant 0 : index
    %25 = vector.load %arg3[%c2_18, %c0_19, %c0_20] : memref<6x1x128xf32, #tpu.memory_space<vmem>>, vector<1x1x128xf32>
    %26 = vector.shape_cast %25 : vector<1x1x128xf32> to vector<1x128xf32>
    %27 = vector.broadcast %26 : vector<1x128xf32> to vector<16x128xf32>
    %28 = arith.addf %24, %27 : vector<16x128xf32>
    %cst_21 = arith.constant 0.000000e+00 : f32
    %29 = vector.broadcast %cst_21 : f32 to vector<16x128xf32>
    %30 = arith.maximumf %28, %29 : vector<16x128xf32>
    %31 = arith.truncf %30 : vector<16x128xf32> to vector<16x128xbf16>
    %c3 = arith.constant 3 : index
    %c0_22 = arith.constant 0 : index
    %c0_23 = arith.constant 0 : index
    %32 = vector.load %arg2[%c3, %c0_22, %c0_23] : memref<6x128x128xbf16, #tpu.memory_space<vmem>>, vector<1x128x128xbf16>
    %33 = vector.shape_cast %32 : vector<1x128x128xbf16> to vector<128x128xbf16>
    %cst_24 = arith.constant dense<0.000000e+00> : vector<16x128xf32>
    %34 = tpu.matmul %31, %33, %cst_24 {dimension_numbers = #tpu.dot_dimension_numbers<[1], [0], [0], [1], [0, 0, 1, 1], [], []>} : vector<16x128xbf16>, vector<128x128xbf16>, vector<16x128xf32> -> vector<16x128xf32>
    %c3_25 = arith.constant 3 : index
    %c0_26 = arith.constant 0 : index
    %c0_27 = arith.constant 0 : index
    %35 = vector.load %arg3[%c3_25, %c0_26, %c0_27] : memref<6x1x128xf32, #tpu.memory_space<vmem>>, vector<1x1x128xf32>
    %36 = vector.shape_cast %35 : vector<1x1x128xf32> to vector<1x128xf32>
    %37 = vector.broadcast %36 : vector<1x128xf32> to vector<16x128xf32>
    %38 = arith.addf %34, %37 : vector<16x128xf32>
    %cst_28 = arith.constant 0.000000e+00 : f32
    %39 = vector.broadcast %cst_28 : f32 to vector<16x128xf32>
    %40 = arith.maximumf %38, %39 : vector<16x128xf32>
    %41 = arith.truncf %40 : vector<16x128xf32> to vector<16x128xbf16>
    %c4 = arith.constant 4 : index
    %c0_29 = arith.constant 0 : index
    %c0_30 = arith.constant 0 : index
    %42 = vector.load %arg2[%c4, %c0_29, %c0_30] : memref<6x128x128xbf16, #tpu.memory_space<vmem>>, vector<1x128x128xbf16>
    %43 = vector.shape_cast %42 : vector<1x128x128xbf16> to vector<128x128xbf16>
    %cst_31 = arith.constant dense<0.000000e+00> : vector<16x128xf32>
    %44 = tpu.matmul %41, %43, %cst_31 {dimension_numbers = #tpu.dot_dimension_numbers<[1], [0], [0], [1], [0, 0, 1, 1], [], []>} : vector<16x128xbf16>, vector<128x128xbf16>, vector<16x128xf32> -> vector<16x128xf32>
    %c4_32 = arith.constant 4 : index
    %c0_33 = arith.constant 0 : index
    %c0_34 = arith.constant 0 : index
    %45 = vector.load %arg3[%c4_32, %c0_33, %c0_34] : memref<6x1x128xf32, #tpu.memory_space<vmem>>, vector<1x1x128xf32>
    %46 = vector.shape_cast %45 : vector<1x1x128xf32> to vector<1x128xf32>
    %47 = vector.broadcast %46 : vector<1x128xf32> to vector<16x128xf32>
    %48 = arith.addf %44, %47 : vector<16x128xf32>
    %cst_35 = arith.constant 0.000000e+00 : f32
    %49 = vector.broadcast %cst_35 : f32 to vector<16x128xf32>
    %50 = arith.maximumf %48, %49 : vector<16x128xf32>
    %51 = arith.truncf %50 : vector<16x128xf32> to vector<16x128xbf16>
    %c5 = arith.constant 5 : index
    %c0_36 = arith.constant 0 : index
    %c0_37 = arith.constant 0 : index
    %52 = vector.load %arg2[%c5, %c0_36, %c0_37] : memref<6x128x128xbf16, #tpu.memory_space<vmem>>, vector<1x128x128xbf16>
    %53 = vector.shape_cast %52 : vector<1x128x128xbf16> to vector<128x128xbf16>
    %cst_38 = arith.constant dense<0.000000e+00> : vector<16x128xf32>
    %54 = tpu.matmul %51, %53, %cst_38 {dimension_numbers = #tpu.dot_dimension_numbers<[1], [0], [0], [1], [0, 0, 1, 1], [], []>} : vector<16x128xbf16>, vector<128x128xbf16>, vector<16x128xf32> -> vector<16x128xf32>
    %c5_39 = arith.constant 5 : index
    %c0_40 = arith.constant 0 : index
    %c0_41 = arith.constant 0 : index
    %55 = vector.load %arg3[%c5_39, %c0_40, %c0_41] : memref<6x1x128xf32, #tpu.memory_space<vmem>>, vector<1x1x128xf32>
    %56 = vector.shape_cast %55 : vector<1x1x128xf32> to vector<1x128xf32>
    %57 = vector.broadcast %56 : vector<1x128xf32> to vector<16x128xf32>
    %58 = arith.addf %54, %57 : vector<16x128xf32>
    %cst_42 = arith.constant 0.000000e+00 : f32
    %59 = vector.broadcast %cst_42 : f32 to vector<16x128xf32>
    %60 = arith.maximumf %58, %59 : vector<16x128xf32>
    %61 = arith.truncf %60 : vector<16x128xf32> to vector<16x128xbf16>
    %c0_43 = arith.constant 0 : index
    %c0_44 = arith.constant 0 : index
    %62 = vector.load %arg4[%c0_43, %c0_44] : memref<16x128xbf16, #tpu.memory_space<vmem>>, vector<16x128xbf16>
    tpu.vector_store %arg4[%c0_43, %c0_44], %61 {strides = array<i32>} : memref<16x128xbf16, #tpu.memory_space<vmem>>, vector<16x128xbf16>,
    return
  }
  func.func @transform_0(%arg0: i32) -> (i32, i32) {
    %c0_i32 = arith.constant 0 : i32
    %c0_i32_0 = arith.constant 0 : i32
    return %arg0, %c0_i32 : i32, i32
  }
  func.func @transform_1(%arg0: i32) -> (i32, i32, i32) {
    %c0_i32 = arith.constant 0 : i32
    %c0_i32_0 = arith.constant 0 : i32
    %c0_i32_1 = arith.constant 0 : i32
    %c0_i32_2 = arith.constant 0 : i32
    return %c0_i32, %c0_i32_0, %c0_i32_1 : i32, i32, i32
  }
  func.func @transform_2(%arg0: i32) -> (i32, i32, i32) {
    %c0_i32 = arith.constant 0 : i32
    %c0_i32_0 = arith.constant 0 : i32
    %c0_i32_1 = arith.constant 0 : i32
    %c0_i32_2 = arith.constant 0 : i32
    return %c0_i32, %c0_i32_0, %c0_i32_1 : i32, i32, i32
  }
  func.func @transform_3(%arg0: i32) -> (i32, i32) {
    %c0_i32 = arith.constant 0 : i32
    %c0_i32_0 = arith.constant 0 : i32
    return %arg0, %c0_i32 : i32, i32
  }
}

</mosaic_0001>

<bundles_post_ra>
// kernel: neural_net_forward.1
= control target key start
LH: loop header
LB: loop body
LE: loop exit
PB: predicated region body
PF: predicated region fallthrough
CT: control target
= control target key end

     0   :  { %8 = vsyncpa [#allocation3], 0  ;;  %s1630_s0 = inlined_call_operand.hbm [shape: f32[30,32], index: 0, kind: input, shape index: {}]   ;;  %s1631_s1 = inlined_call_operand.hbm [shape: bf16[6,128,128], index: 1, kind: input, shape index: {}]   ;;  %s1632_s2 = inlined_call_operand.vmem [shape: f32[6,1,128], index: 2, kind: input, shape index: {}]   ;;  %s1633_s3 = inlined_call_operand.vmem [shape: bf16[30,128], index: 3, kind: output, shape index: {}]  }
   0x1   :  { %10 = vsyncpa [#allocation3 + $0x1], 0 }
   0x2   :  { %11 = vsyncpa [#allocation5], 0  ;;  %s1413_s12 = smov 0   ;;  %s1415_s13 = smov 0  }
   0x3   :  { %s1417_s14 = smov 0   ;;  %s1419_s15 = smov 0  }
   0x4 LB: > { %s954_s16 = sadd.s32 4294967295, %s1383_s15   ;;  %p37_p0 = scmp.ne.s32.totalorder %s1375_s13, %s1371_s12  ;;  %s1383_s15 = sphi %s1419_s15, %s1649_s15   ;;  %s1379_s14 = sphi %s1417_s14, %s1648_s14   ;;  %s1375_s13 = sphi %s1415_s13, %s1647_s13   ;;  %s1371_s12 = sphi %s1413_s12, %s1646_s12  }
   0x5   : > { %p1435_p1 = scmp.eq.s32.totalorder %s954_s16, 0  ;;  %p956_p2 = scmp.ge.s32.totalorder %s1383_s15, 1 }
   0x6   : > { %p116_p3 = scmp.lt.s32.totalorder %s1383_s15, 3  ;;  %s1385_s20 = smov [#allocation4]  }
   0x7   : > { %s1638_s17 = scalar_select %p1435_p1, 1, 0 }
   0x8   : > { %p1443_p4 = por %p1435_p1, %p37_p0  ;;  %p1447_p5 = pnand %p956_p2, %p116_p3 }
   0x9   : > { %s128_s21 = sshll.u32 %s1385_s20, 4  ;;  %s1460_s23 = sadd.s32 1, %s1383_s15   ;;  %s129_s21 = int_to_ptr.vmem [resolvable:$true] %s128_s21 }
   0xa   : > { %s1639_s18 = scalar_select %p1443_p4, 1, 0 }
   0xb   : > { %s1640_s19 = scalar_select %p1447_p5, 1, 0 }
   0xc   : > { %p1195_p6 = pneg %p1447_p5  ;;  %s24_s24 = sadd.s32 1, %s1379_s14 }
   0xd   : > { %s21_s25 = ssub.s32 %s1383_s15, %s1460_s23  ;;  %s1287_s28 = scalar_lea.hbm %s1631_s1, 6144 }
   0xe   : > { %p1455_p7 = pnand %p1195_p6, %p1435_p1  ;;  %p1288_p8 = scmp.ne.s32.totalorder %s1631_s1, %s1287_s28 }
   0xf   : > { %p1294_p12 = scmp.lt.u32.totalorder %s1287_s28, %s1631_s1 }
  0x10   : > { %p1289_p9 = pneg %p1455_p7 }
  0x12   : > { %p1290_p10 = pnand %p1289_p9, %p1288_p8 }
  0x14   : > { %p1291_p11 = pneg %p1290_p10 }
  0x16   : > { %p1296_p13 = pnand %p1294_p12, %p1291_p11 }
  0x18   : > { %1299 = shalt.err (!%p1296_p13)
}
  0x19   : > { %s1300_s6 = scalar_lea.vmem %s129_s21, 6144  ;;  %p1308_p6 = scmp.lt.s32.totalorder %s129_s21, %s129_s21 }
  0x1a   : > { %p1301_p0 = scmp.ne.s32.totalorder %s129_s21, %s1300_s6  ;;  %p1309_p1 = scmp.lt.s32.totalorder %s1300_s6, %s1300_s6 }
  0x1c   : > { %p1303_p2 = pnand %p1301_p0, %p1289_p9  ;;  %p1310_p4 = por %p1309_p1, %p1308_p6 }
  0x1e   : > { %p1304_p3 = pneg %p1303_p2 }
  0x20   : > { %p1311_p5 = pnand %p1310_p4, %p1304_p3 }
  0x22   : > { %1314 = shalt.err (!%p1311_p5)
}
  0x23   : > { %s1386_s7 = smov 64   ;;  %s1387_s8 = smov 4  }
  0x24   : > { %1198 = dma.hbm_to_vmem [thread:$0]  (!%p1455_p7), %s1631_s1, 6144, %s129_s21, [#allocation5], %s1386_s7, %s1386_s7, %s1387_s8  }
  0x25   : > { %p22_p8 = scmp.eq.s32.totalorder %s21_s25, 0  ;;  %p31_p9 = scmp.ne.s32.totalorder %s1379_s14, %s1375_s13 }
  0x26   : > { %p32_p1 = scmp.eq.s32.totalorder %s1383_s15, 0  ;;  %p1204_p4 = scmp.lt.s32.totalorder %s1383_s15, 2 }
  0x27   : > { %s1486_s11 = scalar_select %p22_p8, %s1379_s14, %s24_s24  }
  0x28   : > { %p33_p5 = por %p32_p1, %p31_p9  ;;  %s145_s12 = sand.u32 1, %s1379_s14  }
  0x29   : > { %s959_s20 = sshll.u32 %s145_s12, 4  ;;  %s1025_s26 = sshll.u32 %s1383_s15, 8 }
  0x2a   : > { %s1493_s29 = scalar_lea.hbm %s1630_s0, %s1025_s26  ;;  %s149_s21 = scalar_lea.vmem [#allocation2], %s959_s20 }
  0x2b   : > { %s156_s22 = sshll.u32 %s149_s21, 4  ;;  %p1497_p7 = pnand %p1204_p4, %p33_p5  ;;  %s1495_s22 = int_to_ptr.vmem [resolvable:$true] %s156_s22 }
  0x2c   : > { %s1501_s25 = scalar_lea.sflag [#allocation3], %s145_s12  ;;  %s1315_s30 = scalar_lea.hbm %s1493_s29, 256 }
  0x2d   : > { %p1316_p10 = scmp.ne.s32.totalorder %s1493_s29, %s1315_s30  ;;  %p1317_p11 = pneg %p1497_p7 }
  0x2e   : > { %s1320_s6 = scalar_lea.hbm %s1630_s0, 512  ;;  %p1321_p0 = scmp.lt.u32.totalorder %s1493_s29, %s1630_s0 }
  0x2f   : > { %p1318_p12 = pnand %p1317_p11, %p1316_p10  ;;  %p1322_p2 = scmp.lt.u32.totalorder %s1320_s6, %s1315_s30 }
  0x30   : > { %p1324_p6 = scmp.lt.u32.totalorder %s1315_s30, %s1493_s29 }
  0x31   : > { %p1319_p13 = pneg %p1318_p12  ;;  %p1323_p3 = por %p1322_p2, %p1321_p0 }
  0x33   : > { %p1325_p8 = por %p1324_p6, %p1323_p3 }
  0x35   : > { %p1326_p9 = pnand %p1325_p8, %p1319_p13 }
  0x37   : > { %1329 = shalt.err (!%p1326_p9)
}
  0x38   : > { %s1330_s9 = scalar_lea.vmem %s1495_s22, 256  ;;  %s1388_s10 = smov [#allocation2]  }
  0x39   : > { %p1331_p1 = scmp.ne.s32.totalorder %s1495_s22, %s1330_s9  ;;  %s1335_s12 = sshll.u32 %s1388_s10, 4  ;;  %s1336_s12 = int_to_ptr.vmem [resolvable:$false] %s1335_s12 }
  0x3a   : > { %s1337_s20 = scalar_lea.vmem %s1336_s12, 512  ;;  %p1338_p10 = scmp.lt.s32.totalorder %s1495_s22, %s1336_s12 }
  0x3b   : > { %p1333_p4 = pnand %p1331_p1, %p1317_p11  ;;  %p1339_p12 = scmp.lt.s32.totalorder %s1337_s20, %s1330_s9 }
  0x3d   : > { %p1334_p5 = pneg %p1333_p4  ;;  %p1340_p0 = por %p1339_p12, %p1338_p10 }
  0x3f   : > { %p1341_p2 = pnand %p1340_p0, %p1334_p5 }
  0x41   : > { %1344 = shalt.err (!%p1341_p2)
}
  0x42   : > { %s1389_s26 = smov 128   ;;  %s1390_s27 = smov 8  }
  0x43   : > { %1202 = dma.hbm_to_vmem [thread:$0]  (!%p1497_p7), %s1493_s29, 256, %s1495_s22, %s1501_s25, %s1389_s26, %s1389_s26, %s1390_s27  }
  0x44   : > { %p1643_p11 = scmp.ne.s32.totalorder %s1640_s19, 0 }
  0x45   : > { %s170_s28 = sand.u32 (!%p1643_p11), 1, %s1375_s13   ;;  %p1644_p13 = scmp.ne.s32.totalorder (!%p1643_p11), %s1639_s18, 0 }
  0x46   : > { %168 = sbr.rel (%p1643_p11) target bundleno = 1412 (0x584), region = 32  ;;  %s963_s21 = sshll.u32 (!%p1643_p11), %s170_s28, 4 }
  0x47   : > { %s171_s30 = scalar_lea.sflag (!%p1643_p11), [#allocation3], %s170_s28  ;;  %s174_s4 = scalar_lea.vmem (!%p1643_p11), [#allocation2], %s963_s21 }
  0x4d   : > { %1362 = dma.done.wait (%p1644_p13), %s171_s30, 256  }
  0x4e   : > { %1364 = vsyncadd (%p1644_p13), %s171_s30, 4294967040  ;;  %p1645_p3 = scmp.ne.s32.totalorder %s1638_s17, 0 }
  0x50   : > { %1366 = dma.done.wait (%p1645_p3), [#allocation5], 6144  }
  0x51   : > { %1368 = vsyncadd (%p1645_p3), [#allocation5], 4294961152  ;;  %v1391_v0 = vmov 0.0   ;;  %vm1392_vm0 = vmmov 0   ;;  %v1245_v1 = vld [vmem:[#allocation4] sm:$0xff]   ;;  %v1246_v2 = vld [vmem:[#allocation4 + $0x8] sm:$0xff]  }
  0x52   : > { %1081 = vmatprep.subr.bf16.mxu0 %v1391_v0  ;;  %1085 = vmatprep.mubr.msk.bf16.mxu0 %vm1392_vm0, %v1391_v0  ;;  %v209_v3 = vld [vmem:[%s174_s4] sm:$0xff]  ;;  %v210_v4 = vld [vmem:[%s174_s4 + $0x8] sm:$0xff]  ;;  %vm235_vm1 = vcmask 261120   ;;  %s965_s8 = sshll.u32 %s954_s16, 1 }
  0x53   : > { %1089 = vmatprep.subr.bf16.mxu1 %v1391_v0  ;;  %1105 = vmatprep.mubr.msk.bf16.mxu1 %vm1392_vm0, %v1391_v0  ;;  %v1247_v5 = vld [vmem:[#allocation4 + $0x40] sm:$0xff]   ;;  %v211_v6 = vpack.c.bf16 %v210_v4, %v209_v3  ;;  %v1248_v7 = vld [vmem:[#allocation4 + $0x48] sm:$0xff]   ;;  %v1249_v8 = vld [vmem:[#allocation4 + $0x50] sm:$0xff]   ;;  %p203_p7 = scmp.lt.s32.totalorder %s965_s8, 3 }
  0x54   : > { %1082 = vmatpush3.bf16.msra.mxu0 %v1245_v1  ;;  %1090 = vmatpush3.bf16.msra.mxu1 %v1247_v5  ;;  %v1250_v9 = vld [vmem:[#allocation4 + $0x58] sm:$0xff]   ;;  %v1251_v10 = vld [vmem:[#allocation4 + $0x60] sm:$0xff]   ;;  %v1252_v11 = vld [vmem:[#allocation4 + $0x68] sm:$0xff]  }
  0x55   : > { %1083 = vmatprep.subr.bf16.mxu0 %v1391_v0  ;;  %1091 = vmatprep.subr.bf16.mxu1 %v1391_v0  ;;  %v1253_v12 = vld [vmem:[#allocation4 + $0x70] sm:$0xff]   ;;  %v1254_v13 = vld [vmem:[#allocation4 + $0x78] sm:$0xff]   ;;  %v1255_v14 = vld [vmem:[#allocation4 + $0x80] sm:$0xff]   ;;  %s1651_s8 = smov (!%p203_p7, %s965_s8), 3 }
  0x56   : > { %v1256_v15 = vld [vmem:[#allocation4 + $0x88] sm:$0xff]   ;;  %v1257_v16 = vld [vmem:[#allocation4 + $0x90] sm:$0xff]   ;;  %v1258_v17 = vld [vmem:[#allocation4 + $0x98] sm:$0xff]   ;;  %s966_s12 = sshll.u32 %s1651_s8, 2 }
  0x57   : > { %v1259_v18 = vld [vmem:[#allocation4 + $0xa0] sm:$0xff]   ;;  %v1260_v19 = vld [vmem:[#allocation4 + $0xa8] sm:$0xff]   ;;  %v1261_v30 = vld [vmem:[#allocation4 + $0xb0] sm:$0xff]   ;;  %s206_s15 = scalar_lea.vmem %s1633_s3, %s966_s12 }
  0x58   : > { %1084 = vmatpush3.bf16.msra.mxu0 %v1246_v2  ;;  %1092 = vmatpush3.bf16.msra.mxu1 %v1248_v7  ;;  %v967_v20 = vld [vmem:[%s1632_s2] ss:$0 sm:$0xff]  ;;  %v1262_v31 = vld [vmem:[#allocation4 + $0xb8] sm:$0xff]   ;;  %v1264_v33 = vld [vmem:[#allocation4 + $0xc8] sm:$0xff]  }
  0x59   : > { %1109 = vmatprep.subr.bf16.mxu0 %v1391_v0  ;;  %1093 = vmatprep.subr.bf16.mxu1 %v1391_v0  ;;  %v1263_v32 = vld [vmem:[#allocation4 + $0xc0] sm:$0xff]   ;;  %v1265_v34 = vld [vmem:[#allocation4 + $0xd0] sm:$0xff]   ;;  %v1266_v35 = vld [vmem:[#allocation4 + $0xd8] sm:$0xff]  }
  0x5a   : > { %v1267_v36 = vld [vmem:[#allocation4 + $0xe0] sm:$0xff]   ;;  %v1268_v37 = vld [vmem:[#allocation4 + $0xe8] sm:$0xff]   ;;  %v1269_v48 = vld [vmem:[#allocation4 + $0xf0] sm:$0xff]  }
  0x5b   : > { %1086 = vmatmul.mubr.msk.bf16.vlgmr.msra.gmra.mrb[0].mxu0 %vm235_vm1, %v211_v6  ;;  %v972_v38 = vld [vmem:[%s1632_s2 + $0x1] ss:$0 sm:$0xff]  ;;  %v1270_v49 = vld [vmem:[#allocation4 + $0xf8] sm:$0xff]   ;;  %v1272_v51 = vld [vmem:[#allocation4 + $0x108] sm:$0xff]  }
  0x5c   : > { %1125 = vmatprep.mubr.msk.bf16.mxu0 %vm1392_vm0, %v1391_v0  ;;  %1094 = vmatpush3.bf16.msra.mxu1 %v1249_v8  ;;  %v1271_v50 = vld [vmem:[#allocation4 + $0x100] sm:$0xff]   ;;  %v1273_v52 = vld [vmem:[#allocation4 + $0x110] sm:$0xff]   ;;  %v1274_v53 = vld [vmem:[#allocation4 + $0x118] sm:$0xff]  }
  0x5d   : > { %1095 = vmatprep.subr.bf16.mxu1 %v1391_v0  ;;  %1110 = vmatpush3.bf16.msra.mxu0 %v1255_v14  ;;  %v1275_v54 = vld [vmem:[#allocation4 + $0x120] sm:$0xff]   ;;  %v1276_v55 = vld [vmem:[#allocation4 + $0x128] sm:$0xff]   ;;  %v1277_v3 = vld [vmem:[#allocation4 + $0x130] sm:$0xff]  }
  0x5e   : > { %1111 = vmatprep.subr.bf16.mxu0 %v1391_v0  ;;  %v982_v56 = vld [vmem:[%s1632_s2 + $0x2] ss:$0 sm:$0xff]  ;;  %v1278_v4 = vld [vmem:[#allocation4 + $0x138] sm:$0xff]   ;;  %v1280_v6 = vld [vmem:[#allocation4 + $0x148] sm:$0xff]  }
  0x5f   : > { %v1279_v5 = vld [vmem:[#allocation4 + $0x140] sm:$0xff]   ;;  %v1281_v7 = vld [vmem:[#allocation4 + $0x150] sm:$0xff]   ;;  %v1282_v8 = vld [vmem:[#allocation4 + $0x158] sm:$0xff]  }
  0x60   : > { %1096 = vmatpush3.bf16.msra.mxu1 %v1250_v9  ;;  %v1283_v9 = vld [vmem:[#allocation4 + $0x160] sm:$0xff]  }
  0x61   : > { %1097 = vmatprep.subr.bf16.mxu1 %v1391_v0  ;;  %1112 = vmatpush3.bf16.msra.mxu0 %v1256_v15 }
  0x62   : > { %1113 = vmatprep.subr.bf16.mxu0 %v1391_v0 }
  0x64   : > { %1098 = vmatpush3.bf16.msra.mxu1 %v1251_v10  ;;  %v1284_v10 = vld [vmem:[#allocation4 + $0x168] sm:$0xff]  }
  0x65   : > { %1099 = vmatprep.subr.bf16.mxu1 %v1391_v0  ;;  %1114 = vmatpush3.bf16.msra.mxu0 %v1257_v16 }
  0x66   : > { %1115 = vmatprep.subr.bf16.mxu0 %v1391_v0 }
  0x68   : > { %1100 = vmatpush3.bf16.msra.mxu1 %v1252_v11  ;;  %v992_v11 = vld [vmem:[%s1632_s2 + $0x3] ss:$0 sm:$0xff] }
  0x69   : > { %1101 = vmatprep.subr.bf16.mxu1 %v1391_v0  ;;  %1116 = vmatpush3.bf16.msra.mxu0 %v1258_v17 }
  0x6a   : > { %1117 = vmatprep.subr.bf16.mxu0 %v1391_v0 }
  0x6c   : > { %1102 = vmatpush3.bf16.msra.mxu1 %v1253_v12 }
  0x6d   : > { %1103 = vmatprep.subr.bf16.mxu1 %v1391_v0  ;;  %1118 = vmatpush3.bf16.msra.mxu0 %v1259_v18 }
  0x6e   : > { %1119 = vmatprep.subr.bf16.mxu0 %v1391_v0 }
  0x70   : > { %1104 = vmatpush3.bf16.msra.mxu1 %v1254_v13 }
  0x71   : > { %1129 = vmatprep.subr.bf16.mxu1 %v1391_v0  ;;  %1120 = vmatpush3.bf16.msra.mxu0 %v1260_v19 }
  0x72   : > { %1121 = vmatprep.subr.bf16.mxu0 %v1391_v0 }
  0x75   : > { %1122 = vmatpush3.bf16.msra.mxu0 %v1261_v30 }
  0x76   : > { %1123 = vmatprep.subr.bf16.mxu0 %v1391_v0 }
  0x79   : > { %1124 = vmatpush3.bf16.msra.mxu0 %v1262_v31 }
  0x7a   : > { %1149 = vmatprep.subr.bf16.mxu0 %v1391_v0 }
 0x12e   : > { %v273_v21 = vpop.f32.mrb[0].mxu0 }
 0x12f   : > { %v274_v22 = vadd.f32 %v967_v20, %v273_v21  ;;  %v1087_v23 = vpop.f32.mrb[1].mxu0  ;;  %v1285_v21 = vld [vmem:[#allocation4 + $0x170] sm:$0xff]  }
 0x130   : > { %v276_v24 = vpop.f32.mrb[2].mxu0  ;;  %v1002_v23 = vld [vmem:[%s1632_s2 + $0x4] ss:$0 sm:$0xff] }
 0x131   : > { %v277_v25 = vadd.f32 %v967_v20, %v276_v24  ;;  %v1088_v26 = vpop.f32.mrb[3].mxu0  ;;  %v280_v27 = vmax.f32 %v274_v22, 0.0  ;;  %v1286_v22 = vld [vmem:[#allocation4 + $0x178] sm:$0xff]  }
 0x133   : > { %v281_v28 = vmax.f32 %v277_v25, 0.0 }
 0x135   : > { %v282_v29 = vpack.c.bf16 %v281_v28, %v280_v27 }
 0x137   : > { %1106 = vmatmul.mubr.bf16.vlgmr.msra.gmra.mrb[0].mxu1 %v282_v29 }
 0x138   : > { %1145 = vmatprep.mubr.msk.bf16.mxu1 %vm1392_vm0, %v1391_v0  ;;  %1130 = vmatpush3.bf16.msra.mxu1 %v1263_v32 }
 0x139   : > { %1131 = vmatprep.subr.bf16.mxu1 %v1391_v0 }
 0x13c   : > { %1132 = vmatpush3.bf16.msra.mxu1 %v1264_v33 }
 0x13d   : > { %1133 = vmatprep.subr.bf16.mxu1 %v1391_v0 }
 0x140   : > { %1134 = vmatpush3.bf16.msra.mxu1 %v1265_v34 }
 0x141   : > { %1135 = vmatprep.subr.bf16.mxu1 %v1391_v0 }
 0x144   : > { %1136 = vmatpush3.bf16.msra.mxu1 %v1266_v35 }
 0x145   : > { %1137 = vmatprep.subr.bf16.mxu1 %v1391_v0 }
 0x148   : > { %1138 = vmatpush3.bf16.msra.mxu1 %v1267_v36 }
 0x149   : > { %1139 = vmatprep.subr.bf16.mxu1 %v1391_v0 }
 0x14c   : > { %1140 = vmatpush3.bf16.msra.mxu1 %v1268_v37 }
 0x14d   : > { %1141 = vmatprep.subr.bf16.mxu1 %v1391_v0 }
 0x150   : > { %1142 = vmatpush3.bf16.msra.mxu1 %v1269_v48 }
 0x151   : > { %1143 = vmatprep.subr.bf16.mxu1 %v1391_v0 }
 0x154   : > { %1144 = vmatpush3.bf16.msra.mxu1 %v1270_v49 }
 0x155   : > { %1169 = vmatprep.subr.bf16.mxu1 %v1391_v0 }
 0x20a   : > { %v390_v39 = vpop.f32.mrb[0].mxu1 }
 0x20b   : > { %v391_v40 = vadd.f32 %v972_v38, %v390_v39  ;;  %v1107_v41 = vpop.f32.mrb[1].mxu1 }
 0x20c   : > { %v393_v42 = vpop.f32.mrb[2].mxu1 }
 0x20d   : > { %v394_v43 = vadd.f32 %v972_v38, %v393_v42  ;;  %v1108_v44 = vpop.f32.mrb[3].mxu1  ;;  %v397_v45 = vmax.f32 %v391_v40, 0.0 }
 0x20f   : > { %v398_v46 = vmax.f32 %v394_v43, 0.0 }
 0x211   : > { %v399_v47 = vpack.c.bf16 %v398_v46, %v397_v45 }
 0x213   : > { %1126 = vmatmul.mubr.bf16.vlgmr.msra.gmra.mrb[4].mxu0 %v399_v47 }
 0x214   : > { %1165 = vmatprep.mubr.msk.bf16.mxu0 %vm1392_vm0, %v1391_v0  ;;  %1150 = vmatpush3.bf16.msra.mxu0 %v1271_v50 }
 0x215   : > { %1151 = vmatprep.subr.bf16.mxu0 %v1391_v0 }
 0x218   : > { %1152 = vmatpush3.bf16.msra.mxu0 %v1272_v51 }
 0x219   : > { %1153 = vmatprep.subr.bf16.mxu0 %v1391_v0 }
 0x21c   : > { %1154 = vmatpush3.bf16.msra.mxu0 %v1273_v52 }
 0x21d   : > { %1155 = vmatprep.subr.bf16.mxu0 %v1391_v0 }
 0x220   : > { %1156 = vmatpush3.bf16.msra.mxu0 %v1274_v53 }
 0x221   : > { %1157 = vmatprep.subr.bf16.mxu0 %v1391_v0 }
 0x224   : > { %1158 = vmatpush3.bf16.msra.mxu0 %v1275_v54 }
 0x225   : > { %1159 = vmatprep.subr.bf16.mxu0 %v1391_v0 }
 0x228   : > { %1160 = vmatpush3.bf16.msra.mxu0 %v1276_v55 }
 0x229   : > { %1161 = vmatprep.subr.bf16.mxu0 %v1391_v0 }
 0x22c   : > { %1162 = vmatpush3.bf16.msra.mxu0 %v1277_v3 }
 0x22d   : > { %1163 = vmatprep.subr.bf16.mxu0 %v1391_v0 }
 0x230   : > { %1164 = vmatpush3.bf16.msra.mxu0 %v1278_v4 }
 0x2e6   : > { %v507_v57 = vpop.f32.mrb[4].mxu0 }
 0x2e7   : > { %v508_v58 = vadd.f32 %v982_v56, %v507_v57  ;;  %v1127_v59 = vpop.f32.mrb[5].mxu0 }
 0x2e8   : > { %v510_v60 = vpop.f32.mrb[6].mxu0 }
 0x2e9   : > { %v511_v61 = vadd.f32 %v982_v56, %v510_v60  ;;  %v1128_v62 = vpop.f32.mrb[7].mxu0  ;;  %v514_v63 = vmax.f32 %v508_v58, 0.0 }
 0x2eb   : > { %v515_v1 = vmax.f32 %v511_v61, 0.0 }
 0x2ed   : > { %v516_v2 = vpack.c.bf16 %v515_v1, %v514_v63 }
 0x2ef   : > { %1146 = vmatmul.mubr.bf16.vlgmr.msra.gmra.mrb[4].mxu1 %v516_v2 }
 0x2f0   : > { %1185 = vmatprep.mubr.msk.bf16.mxu1 %vm1392_vm0, %v1391_v0  ;;  %1170 = vmatpush3.bf16.msra.mxu1 %v1279_v5 }
 0x2f1   : > { %1171 = vmatprep.subr.bf16.mxu1 %v1391_v0 }
 0x2f4   : > { %1172 = vmatpush3.bf16.msra.mxu1 %v1280_v6 }
 0x2f5   : > { %1173 = vmatprep.subr.bf16.mxu1 %v1391_v0 }
 0x2f8   : > { %1174 = vmatpush3.bf16.msra.mxu1 %v1281_v7 }
 0x2f9   : > { %1175 = vmatprep.subr.bf16.mxu1 %v1391_v0 }
 0x2fc   : > { %1176 = vmatpush3.bf16.msra.mxu1 %v1282_v8 }
 0x2fd   : > { %1177 = vmatprep.subr.bf16.mxu1 %v1391_v0 }
 0x300   : > { %1178 = vmatpush3.bf16.msra.mxu1 %v1283_v9 }
 0x301   : > { %1179 = vmatprep.subr.bf16.mxu1 %v1391_v0 }
 0x304   : > { %1180 = vmatpush3.bf16.msra.mxu1 %v1284_v10 }
 0x305   : > { %1181 = vmatprep.subr.bf16.mxu1 %v1391_v0 }
 0x308   : > { %1182 = vmatpush3.bf16.msra.mxu1 %v1285_v21 }
 0x309   : > { %1183 = vmatprep.subr.bf16.mxu1 %v1391_v0  ;;  %v1012_v0 = vld [vmem:[%s1632_s2 + $0x5] ss:$0 sm:$0xff] }
 0x30c   : > { %1184 = vmatpush3.bf16.msra.mxu1 %v1286_v22 }
 0x3c2   : > { %v624_v12 = vpop.f32.mrb[4].mxu1 }
 0x3c3   : > { %v625_v13 = vadd.f32 %v992_v11, %v624_v12  ;;  %v1147_v14 = vpop.f32.mrb[5].mxu1 }
 0x3c4   : > { %v627_v15 = vpop.f32.mrb[6].mxu1 }
 0x3c5   : > { %v628_v16 = vadd.f32 %v992_v11, %v627_v15  ;;  %v1148_v17 = vpop.f32.mrb[7].mxu1  ;;  %v631_v18 = vmax.f32 %v625_v13, 0.0 }
 0x3c7   : > { %v632_v19 = vmax.f32 %v628_v16, 0.0 }
 0x3c9   : > { %v633_v20 = vpack.c.bf16 %v632_v19, %v631_v18 }
 0x3cb   : > { %1166 = vmatmul.mubr.bf16.vlgmr.msra.gmra.mrb[8].mxu0 %v633_v20 }
 0x49e   : > { %v741_v24 = vpop.f32.mrb[8].mxu0 }
 0x49f   : > { %v742_v25 = vadd.f32 %v1002_v23, %v741_v24  ;;  %v1167_v26 = vpop.f32.mrb[9].mxu0 }
 0x4a0   : > { %v744_v27 = vpop.f32.mrb[10].mxu0 }
 0x4a1   : > { %v745_v28 = vadd.f32 %v1002_v23, %v744_v27  ;;  %v1168_v29 = vpop.f32.mrb[11].mxu0  ;;  %v748_v30 = vmax.f32 %v742_v25, 0.0 }
 0x4a3   : > { %v749_v31 = vmax.f32 %v745_v28, 0.0 }
 0x4a5   : > { %v750_v32 = vpack.c.bf16 %v749_v31, %v748_v30 }
 0x4a7   : > { %1186 = vmatmul.mubr.bf16.vlgmr.msra.gmra.mrb[8].mxu1 %v750_v32 }
 0x57a   : > { %v858_v33 = vpop.f32.mrb[8].mxu1 }
 0x57b   : > { %v859_v34 = vadd.f32 %v1012_v0, %v858_v33  ;;  %v1187_v35 = vpop.f32.mrb[9].mxu1 }
 0x57c   : > { %v861_v36 = vpop.f32.mrb[10].mxu1 }
 0x57d   : > { %v862_v37 = vadd.f32 %v1012_v0, %v861_v36  ;;  %v1188_v38 = vpop.f32.mrb[11].mxu1  ;;  %v865_v39 = vmax.f32 %v859_v34, 0.0 }
 0x57f   : > { %v866_v40 = vmax.f32 %v862_v37, 0.0 }
 0x581   : > { %v1031_v41 = vpack.c.bf16 %v866_v40, %v865_v39 }
 0x583   : > { %1032 = vst [vmem:[%s206_s15] sm:$0xff] %v1031_v41  }
 0x584 PF: > { %p14_p6 = scmp.ge.s32.totalorder %s1460_s23, 4   ;;  %s1646_s12 = smov %s1375_s13 }
 0x585   : > { %s1647_s13 = smov %s1379_s14  ;;  %s1648_s14 = smov %s1486_s11 }
 0x586   : > { %s1649_s15 = smov %s1460_s23  ;;  %16 = sbr.rel (!%p14_p6) target bundleno = 4 (0x4), region = 86 }
 0x58d   :  { %899 = vsyncpa [#allocation3], 1 }
 0x58e   :  { %901 = vsyncpa [#allocation3 + $0x1], 1 }
 0x58f   :  { %902 = vsyncpa [#allocation5], 1 }

</bundles_post_ra>
